<compile_context>
chip_gen: v7x
topology: tpu7x:2x2x1
jax: 0.10.0
libtpu: 0.0.40
codegen_flags: <defaults>
</compile_context>

<pallas_src>
import jax
import jax.numpy as jnp
from jax.experimental import pallas as pl
from jax.experimental.pallas import tpu as pltpu


def attn_classifier_kernel(x_ref, w1_ref, b1_ref, w2_ref, wm_ref, bm_ref,
                           logp_ref, attn_ref):
    TB, S, H = x_ref.shape          # static block shape
    A_pad = w1_ref.shape[1]

    x3 = x_ref[...]                                  # [TB, S, H]
    # Merge (TB, S) -> TB*S rows; S == 8 (sublane tile) so this is layout-free.
    xf = x3.reshape(TB * S, H)

    # ---- linear1 + relu: one big MXU matmul with M = TB*S rows -------------
    h = jnp.dot(xf, w1_ref[...], preferred_element_type=jnp.float32) + b1_ref[...]
    h = jnp.maximum(h, 0.0)                          # [TB*S, A_pad]
    h3 = h.reshape(TB, S, A_pad)                     # split leading dims back

    # ---- linear2 (bias dropped: softmax shift invariance) ------------------
    # Batched q@k^T contraction over the padded A axis -> lane-dense scores.
    w2b = jnp.broadcast_to(w2_ref[...], (TB, 1, A_pad))
    scores = jnp.einsum('tqa,tsa->tqs', w2b, h3,
                        preferred_element_type=jnp.float32).reshape(TB, S)

    # ---- softmax over the sequence (lane) axis — exact divide --------------
    m = jnp.max(scores, axis=-1, keepdims=True)
    e = jnp.exp(scores - m)
    attn = e / jnp.sum(e, axis=-1, keepdims=True)    # [TB, S]
    attn_ref[...] = attn                             # sublane-filled, lane-dense store

    # ---- attention pooling on the MXU: [TB,1,S] @ [TB,S,H] -> [TB,1,H] -----
    feats = jnp.einsum('tqs,tsh->tqh', attn.reshape(TB, 1, S), x3,
                       preferred_element_type=jnp.float32).reshape(TB, H)

    # ---- classifier head + log_softmax over classes (lane axis) ------------
    logits = jnp.dot(feats, wm_ref[...],
                     preferred_element_type=jnp.float32) + bm_ref[...]        # [TB, C]
    lm = jnp.max(logits, axis=-1, keepdims=True)
    lse = jnp.log(jnp.sum(jnp.exp(logits - lm), axis=-1, keepdims=True)) + lm
    logp_ref[...] = logits - lse                     # [TB, C]


def attn_classifier(x, w1, b1, w2, b2, wm, bm, *, batch_tile=8):
    """x: [B, S, H] float32. Returns (log_probs [B, C], attns [B, S, 1]).

    batch_tile should be a multiple of 8 (sublane tile) when B > batch_tile.
    b2 is accepted for API parity but never used: softmax over S is invariant
    to a per-row constant shift, so linear2's bias is a mathematical no-op.
    """
    B, S, H = x.shape
    A = w1.shape[1]
    C = wm.shape[1]
    f32 = jnp.float32

    # --- batch tiling: TB sequences per grid step ---------------------------
    TB = min(batch_tile, B)
    n_steps = pl.cdiv(B, TB)
    Bp = n_steps * TB

    xp = x.astype(f32)               # production H: cast to bfloat16 here
    if Bp != B:
        # Zero sequences are harmless: softmax of constant scores is uniform,
        # so no NaN/Inf; padded rows are sliced off below.
        xp = jnp.pad(xp, ((0, Bp - B), (0, 0), (0, 0)))

    # --- one-time wrapper-side weight prep (do at param init in a real model)
    # Pad the attention hidden dim A to a full 128-lane width (exact: padded
    # b1/w1 columns give relu(0)=0 and the padded w2 lanes are zero).
    A_pad = ((A + 127) // 128) * 128
    w1p = jnp.zeros((H, A_pad), f32).at[:, :A].set(w1.astype(f32))
    b1p = jnp.zeros((1, A_pad), f32).at[:, :A].set(b1.reshape(1, A).astype(f32))
    w2p = jnp.zeros((1, 1, A_pad), f32).at[0, 0, :A].set(w2.reshape(A).astype(f32))
    wm_ = wm.astype(f32)
    bm_ = bm.reshape(1, C).astype(f32)
    del b2                           # dropped: see docstring (softmax shift invariance)

    logp, attn = pl.pallas_call(
        attn_classifier_kernel,
        out_shape=(
            jax.ShapeDtypeStruct((Bp, C), f32),   # log-probs, sublane-filled blocks
            jax.ShapeDtypeStruct((Bp, S), f32),   # attention weights, lane-dense
        ),
        grid=(n_steps,),                           # TB sequences per grid step
        in_specs=[
            pl.BlockSpec((TB, S, H), lambda b: (b, 0, 0)),       # x tile
            # Weight operands below have constant index maps (fetched once).
            # At production H add pipeline_mode=pl.Buffered(1) to single-buffer
            # them and reclaim VMEM for a larger TB (esp. v7x's 64 MiB).
            pl.BlockSpec((H, A_pad), lambda b: (0, 0)),          # w1 (A padded)
            pl.BlockSpec((1, A_pad), lambda b: (0, 0)),          # b1 (A padded)
            pl.BlockSpec((1, 1, A_pad), lambda b: (0, 0, 0)),    # w2 row (A padded)
            pl.BlockSpec((H, C), lambda b: (0, 0)),              # wm
            pl.BlockSpec((1, C), lambda b: (0, 0)),              # bm
        ],
        out_specs=(
            pl.BlockSpec((TB, C), lambda b: (b, 0)),
            pl.BlockSpec((TB, S), lambda b: (b, 0)),
        ),
        compiler_params=pltpu.CompilerParams(
            # Batch steps are independent; "parallel" lets megacore shard them.
            # TODO: on v7x verify this shards across the 2 TensorCores; if not,
            # use pltpu.CORE_PARALLEL (or pl.core_map over a tensorcore mesh).
            dimension_semantics=("parallel",),
            # Plenty for this toy tile and safe on v5e/v6e/v7x.  Re-derive with
            # TB at production scale: <=48-56 MiB on v7x (64 MiB physical),
            # 64-96 MiB on v5e/v6e (128 MiB physical).
            vmem_limit_bytes=32 * 1024 * 1024,
        ),
    )(xp, w1p, b1p, w2p, wm_, bm_)

    # Wrapper-side slicing / layout plumbing (pure metadata ops).
    return logp[:B], attn[:B].reshape(B, S, 1)


def _init_linear(key, fan_in, fan_out):
    """PyTorch nn.Linear-style uniform(-1/sqrt(fan_in), 1/sqrt(fan_in)) init."""
    kw, kb = jax.random.split(key)
    bound = 1.0 / jnp.sqrt(fan_in)
    w = jax.random.uniform(kw, (fan_in, fan_out), jnp.float32, -bound, bound)
    b = jax.random.uniform(kb, (1, fan_out), jnp.float32, -bound, bound)
    return w, b


def _reference(x, w1, b1, w2, b2, wm, bm):
    B, S, H = x.shape
    hp = jax.lax.Precision.HIGHEST
    h = jax.nn.relu(jnp.dot(x.reshape(B * S, H), w1, precision=hp) + b1)
    scores = (jnp.dot(h, w2, precision=hp) + b2).reshape(B, S)   # b2 kept here on purpose
    attn = jax.nn.softmax(scores, axis=1)[:, :, None]
    feats = (x * attn).sum(axis=1)
    logp = jax.nn.log_softmax(jnp.dot(feats, wm, precision=hp) + bm, axis=1)
    return logp, attn


if __name__ == "__main__":
    B, S, H = 16, 8, 32          # batch, seq, hidden_size (small; grid has 2 steps)
    ATT_HIDDEN = 24              # fixed in Attn(hidden_size, 24)
    C = 4                        # class_num

    key = jax.random.PRNGKey(0)
    kx, k1, k2, km = jax.random.split(key, 4)

    x = jax.random.normal(kx, (B, S, H), jnp.float32)
    w1, b1 = _init_linear(k1, H, ATT_HIDDEN)     # attn.linear1
    w2, b2 = _init_linear(k2, ATT_HIDDEN, 1)     # attn.linear2
    wm, bm = _init_linear(km, H, C)              # classifier head

    logp, attns = attn_classifier(x, w1, b1, w2, b2, wm, bm)
    jax.block_until_ready((logp, attns))

    ref_logp, ref_attns = _reference(x, w1, b1, w2, b2, wm, bm)
    # Tolerance tightened from 5e-3 -> 1e-3 after removing the approximate
    # reciprocal; remaining slack only covers MXU-multipass vs XLA-HIGHEST f32
    # matmul differences (the softmax path is now exact).
    assert jnp.allclose(attns, ref_attns, atol=1e-3, rtol=1e-3)
    assert jnp.allclose(logp, ref_logp, atol=1e-3, rtol=1e-3)

    print("KERNEL_OK")
</pallas_src>

<mosaic_0001>
module attributes {stable_mosaic.version = 11 : i64} {
  func.func @attn_classifier_kernel(%arg0: i32, %arg1: memref<8x8x32xf32, #tpu.memory_space<vmem>>, %arg2: memref<32x128xf32, #tpu.memory_space<vmem>>, %arg3: memref<1x128xf32, #tpu.memory_space<vmem>>, %arg4: memref<1x1x128xf32, #tpu.memory_space<vmem>>, %arg5: memref<32x4xf32, #tpu.memory_space<vmem>>, %arg6: memref<1x4xf32, #tpu.memory_space<vmem>>, %arg7: memref<8x4xf32, #tpu.memory_space<vmem>>, %arg8: memref<8x8xf32, #tpu.memory_space<vmem>>) attributes {dimension_semantics = [#tpu.dimension_semantics<parallel>], iteration_bounds = array<i64: 2>, scalar_prefetch = 0 : i64, scratch_operands = 0 : i64, tpu.core_type = #tpu.core_type<tc>, window_params = [{transform_indices = @transform_0, window_bounds = array<i64: 8, 8, 32>}, {pipeline_mode = #tpu.pipeline_mode<synchronous>, transform_indices = @transform_1, window_bounds = array<i64: 32, 128>}, {pipeline_mode = #tpu.pipeline_mode<synchronous>, transform_indices = @transform_2, window_bounds = array<i64: 1, 128>}, {pipeline_mode = #tpu.pipeline_mode<synchronous>, transform_indices = @transform_3, window_bounds = array<i64: 1, 1, 128>}, {pipeline_mode = #tpu.pipeline_mode<synchronous>, transform_indices = @transform_4, window_bounds = array<i64: 32, 4>}, {pipeline_mode = #tpu.pipeline_mode<synchronous>, transform_indices = @transform_5, window_bounds = array<i64: 1, 4>}, {transform_indices = @transform_6, window_bounds = array<i64: 8, 4>}, {transform_indices = @transform_7, window_bounds = array<i64: 8, 8>}]} {
    %c0 = arith.constant 0 : index
    %c0_0 = arith.constant 0 : index
    %c0_1 = arith.constant 0 : index
    %0 = vector.load %arg1[%c0, %c0_0, %c0_1] : memref<8x8x32xf32, #tpu.memory_space<vmem>>, vector<8x8x32xf32>
    %1 = vector.shape_cast %0 : vector<8x8x32xf32> to vector<64x32xf32>
    %c0_2 = arith.constant 0 : index
    %c0_3 = arith.constant 0 : index
    %2 = vector.load %arg2[%c0_2, %c0_3] : memref<32x128xf32, #tpu.memory_space<vmem>>, vector<32x128xf32>
    %cst = arith.constant dense<0.000000e+00> : vector<64x128xf32>
    %3 = tpu.matmul %1, %2, %cst {dimension_numbers = #tpu.dot_dimension_numbers<[1], [0], [0], [1], [0, 0, 1, 1], [], []>} : vector<64x32xf32>, vector<32x128xf32>, vector<64x128xf32> -> vector<64x128xf32>
    %c0_4 = arith.constant 0 : index
    %c0_5 = arith.constant 0 : index
    %4 = vector.load %arg3[%c0_4, %c0_5] : memref<1x128xf32, #tpu.memory_space<vmem>>, vector<1x128xf32>
    %5 = vector.broadcast %4 : vector<1x128xf32> to vector<64x128xf32>
    %6 = arith.addf %3, %5 : vector<64x128xf32>
    %cst_6 = arith.constant 0.000000e+00 : f32
    %7 = vector.broadcast %cst_6 : f32 to vector<64x128xf32>
    %8 = arith.maximumf %6, %7 : vector<64x128xf32>
    %9 = vector.shape_cast %8 : vector<64x128xf32> to vector<8x8x128xf32>
    %c0_7 = arith.constant 0 : index
    %c0_8 = arith.constant 0 : index
    %c0_9 = arith.constant 0 : index
    %10 = vector.load %arg4[%c0_7, %c0_8, %c0_9] : memref<1x1x128xf32, #tpu.memory_space<vmem>>, vector<1x1x128xf32>
    %11 = vector.shape_cast %10 : vector<1x1x128xf32> to vector<1x1x128xf32>
    %12 = vector.broadcast %11 : vector<1x1x128xf32> to vector<8x1x128xf32>
    "tpu.trace_start"() <{level = 10 : i32, message = "tqa,tsa->tqs"}> : () -> ()
    %cst_10 = arith.constant dense<0.000000e+00> : vector<8x1x8xf32>
    %13 = tpu.matmul %12, %9, %cst_10 {dimension_numbers = #tpu.dot_dimension_numbers<[2], [2], [1], [1], [0, 0, 0, 1, 1, 1], [0], [0]>} : vector<8x1x128xf32>, vector<8x8x128xf32>, vector<8x1x8xf32> -> vector<8x1x8xf32>
    "tpu.trace_stop"() : () -> ()
    %14 = vector.shape_cast %13 : vector<8x1x8xf32> to vector<8x8xf32>
    %cst_11 = arith.constant dense<0xFF800000> : vector<8xf32>
    %15 = vector.multi_reduction <maximumf>, %14, %cst_11 [1] : vector<8x8xf32> to vector<8xf32>
    %16 = vector.shape_cast %15 : vector<8xf32> to vector<8x1xf32>
    %17 = vector.broadcast %16 : vector<8x1xf32> to vector<8x8xf32>
    %18 = arith.subf %14, %17 : vector<8x8xf32>
    %19 = math.exp %18 : vector<8x8xf32>
    %cst_12 = arith.constant dense<0.000000e+00> : vector<8xf32>
    %20 = vector.multi_reduction <add>, %19, %cst_12 [1] : vector<8x8xf32> to vector<8xf32>
    %21 = vector.shape_cast %20 : vector<8xf32> to vector<8x1xf32>
    %22 = vector.broadcast %21 : vector<8x1xf32> to vector<8x8xf32>
    %23 = arith.divf %19, %22 : vector<8x8xf32>
    %c0_13 = arith.constant 0 : index
    %c0_14 = arith.constant 0 : index
    %24 = vector.load %arg8[%c0_13, %c0_14] : memref<8x8xf32, #tpu.memory_space<vmem>>, vector<8x8xf32>
    tpu.vector_store %arg8[%c0_13, %c0_14], %23 {strides = array<i32>} : memref<8x8xf32, #tpu.memory_space<vmem>>, vector<8x8xf32>,
    %25 = vector.shape_cast %23 : vector<8x8xf32> to vector<8x1x8xf32>
    "tpu.trace_start"() <{level = 10 : i32, message = "tqs,tsh->tqh"}> : () -> ()
    %cst_15 = arith.constant dense<0.000000e+00> : vector<8x1x32xf32>
    %26 = tpu.matmul %25, %0, %cst_15 {dimension_numbers = #tpu.dot_dimension_numbers<[2], [1], [1], [2], [0, 0, 0, 1, 1, 2], [0], [0]>} : vector<8x1x8xf32>, vector<8x8x32xf32>, vector<8x1x32xf32> -> vector<8x1x32xf32>
    "tpu.trace_stop"() : () -> ()
    %27 = vector.shape_cast %26 : vector<8x1x32xf32> to vector<8x32xf32>
    %c0_16 = arith.constant 0 : index
    %c0_17 = arith.constant 0 : index
    %28 = vector.load %arg5[%c0_16, %c0_17] : memref<32x4xf32, #tpu.memory_space<vmem>>, vector<32x4xf32>
    %cst_18 = arith.constant dense<0.000000e+00> : vector<8x4xf32>
    %29 = tpu.matmul %27, %28, %cst_18 {dimension_numbers = #tpu.dot_dimension_numbers<[1], [0], [0], [1], [0, 0, 1, 1], [], []>} : vector<8x32xf32>, vector<32x4xf32>, vector<8x4xf32> -> vector<8x4xf32>
    %c0_19 = arith.constant 0 : index
    %c0_20 = arith.constant 0 : index
    %30 = vector.load %arg6[%c0_19, %c0_20] : memref<1x4xf32, #tpu.memory_space<vmem>>, vector<1x4xf32>
    %31 = vector.broadcast %30 : vector<1x4xf32> to vector<8x4xf32>
    %32 = arith.addf %29, %31 : vector<8x4xf32>
    %cst_21 = arith.constant dense<0xFF800000> : vector<8xf32>
    %33 = vector.multi_reduction <maximumf>, %32, %cst_21 [1] : vector<8x4xf32> to vector<8xf32>
    %34 = vector.shape_cast %33 : vector<8xf32> to vector<8x1xf32>
    %35 = vector.broadcast %34 : vector<8x1xf32> to vector<8x4xf32>
    %36 = arith.subf %32, %35 : vector<8x4xf32>
    %37 = math.exp %36 : vector<8x4xf32>
    %cst_22 = arith.constant dense<0.000000e+00> : vector<8xf32>
    %38 = vector.multi_reduction <add>, %37, %cst_22 [1] : vector<8x4xf32> to vector<8xf32>
    %39 = vector.shape_cast %38 : vector<8xf32> to vector<8x1xf32>
    %40 = math.log %39 : vector<8x1xf32>
    %41 = arith.addf %40, %34 : vector<8x1xf32>
    %42 = vector.broadcast %41 : vector<8x1xf32> to vector<8x4xf32>
    %43 = arith.subf %32, %42 : vector<8x4xf32>
    %c0_23 = arith.constant 0 : index
    %c0_24 = arith.constant 0 : index
    %44 = vector.load %arg7[%c0_23, %c0_24] : memref<8x4xf32, #tpu.memory_space<vmem>>, vector<8x4xf32>
    tpu.vector_store %arg7[%c0_23, %c0_24], %43 {strides = array<i32>} : memref<8x4xf32, #tpu.memory_space<vmem>>, vector<8x4xf32>,
    return
  }
  func.func @transform_0(%arg0: i32) -> (i32, i32, i32) {
    %c0_i32 = arith.constant 0 : i32
    %c0_i32_0 = arith.constant 0 : i32
    %c0_i32_1 = arith.constant 0 : i32
    return %arg0, %c0_i32, %c0_i32_0 : i32, i32, i32
  }
  func.func @transform_1(%arg0: i32) -> (i32, i32) {
    %c0_i32 = arith.constant 0 : i32
    %c0_i32_0 = arith.constant 0 : i32
    %c0_i32_1 = arith.constant 0 : i32
    return %c0_i32, %c0_i32_0 : i32, i32
  }
  func.func @transform_2(%arg0: i32) -> (i32, i32) {
    %c0_i32 = arith.constant 0 : i32
    %c0_i32_0 = arith.constant 0 : i32
    %c0_i32_1 = arith.constant 0 : i32
    return %c0_i32, %c0_i32_0 : i32, i32
  }
  func.func @transform_3(%arg0: i32) -> (i32, i32, i32) {
    %c0_i32 = arith.constant 0 : i32
    %c0_i32_0 = arith.constant 0 : i32
    %c0_i32_1 = arith.constant 0 : i32
    %c0_i32_2 = arith.constant 0 : i32
    return %c0_i32, %c0_i32_0, %c0_i32_1 : i32, i32, i32
  }
  func.func @transform_4(%arg0: i32) -> (i32, i32) {
    %c0_i32 = arith.constant 0 : i32
    %c0_i32_0 = arith.constant 0 : i32
    %c0_i32_1 = arith.constant 0 : i32
    return %c0_i32, %c0_i32_0 : i32, i32
  }
  func.func @transform_5(%arg0: i32) -> (i32, i32) {
    %c0_i32 = arith.constant 0 : i32
    %c0_i32_0 = arith.constant 0 : i32
    %c0_i32_1 = arith.constant 0 : i32
    return %c0_i32, %c0_i32_0 : i32, i32
  }
  func.func @transform_6(%arg0: i32) -> (i32, i32) {
    %c0_i32 = arith.constant 0 : i32
    %c0_i32_0 = arith.constant 0 : i32
    return %arg0, %c0_i32 : i32, i32
  }
  func.func @transform_7(%arg0: i32) -> (i32, i32) {
    %c0_i32 = arith.constant 0 : i32
    %c0_i32_0 = arith.constant 0 : i32
    return %arg0, %c0_i32 : i32, i32
  }
}

</mosaic_0001>

<bundles_post_ra>
// kernel: tpu_custom_call.1
= control target key start
LH: loop header
LB: loop body
LE: loop exit
PB: predicated region body
PF: predicated region fallthrough
CT: control target
= control target key end

     0   :  { %13 = vsyncpa [#allocation3], 0  ;;  %s2657_s0 = inlined_call_operand.hbm [shape: f32[16,8,32], index: 0, kind: input, shape index: {}]   ;;  %s2658_s1 = inlined_call_operand.vmem [shape: f32[32,128], index: 1, kind: input, shape index: {}]   ;;  %s2659_s2 = inlined_call_operand.vmem [shape: f32[1,128], index: 2, kind: input, shape index: {}]   ;;  %s2660_s3 = inlined_call_operand.vmem [shape: f32[1,1,128], index: 3, kind: input, shape index: {}]   ;;  %s2661_s4 = inlined_call_operand.vmem [shape: f32[32,4], index: 4, kind: input, shape index: {}]   ;;  %s2662_s5 = inlined_call_operand.vmem [shape: f32[1,4], index: 5, kind: input, shape index: {}]   ;;  %s2663_s6 = inlined_call_operand.vmem [shape: f32[16,4], index: 6, kind: output, shape index: {0}]   ;;  %s2664_s7 = inlined_call_operand.vmem [shape: f32[16,8], index: 7, kind: output, shape index: {1}]  }
   0x1   :  { %15 = vsyncpa [#allocation3 + $0x1], 0  ;;  %s2373_s24 = smov 0   ;;  %s2375_s25 = smov 0  }
   0x2   :  { %s2377_s26 = smov 0   ;;  %s2379_s27 = smov 0  }
   0x3 LB: > { %s2392_s28 = sadd.s32 4294967295, %s2325_s27   ;;  %s2395_s29 = sadd.s32 1, %s2325_s27   ;;  %s2325_s27 = sphi %s2379_s27, %s2671_s27   ;;  %s2321_s26 = sphi %s2377_s26, %s2670_s26   ;;  %s2317_s25 = sphi %s2375_s25, %s2669_s25   ;;  %s2313_s24 = sphi %s2373_s24, %s2668_s24  }
   0x4   : > { %s25_s30 = ssub.s32 %s2325_s27, %s2395_s29  ;;  %s28_s8 = sadd.s32 1, %s2321_s26 }
   0x5   : > { %p26_p0 = scmp.eq.s32.totalorder %s25_s30, 0  ;;  %p35_p1 = scmp.ne.s32.totalorder %s2321_s26, %s2317_s25 }
   0x6   : > { %p36_p2 = scmp.eq.s32.totalorder %s2325_s27, 0  ;;  %p41_p3 = scmp.ne.s32.totalorder %s2317_s25, %s2313_s24 }
   0x7   : > { %s2405_s9 = scalar_select %p26_p0, %s2321_s26, %s28_s8  }
   0x8   : > { %p37_p4 = por %p36_p2, %p35_p1  ;;  %p42_p5 = scmp.eq.s32.totalorder %s2392_s28, 0 }
   0x9   : > { %p2187_p6 = scmp.lt.s32.totalorder %s2325_s27, 2  ;;  %s237_s11 = sand.u32 1, %s2321_s26  }
   0xa   : > { %p2409_p7 = por %p42_p5, %p41_p3  ;;  %s1978_s12 = sshll.u32 %s237_s11, 6 }
   0xb   : > { %s2006_s13 = sshll.u32 %s2325_s27, 10  ;;  %s241_s17 = scalar_lea.vmem [#allocation2], %s1978_s12 }
   0xc   : > { %s2418_s16 = scalar_lea.hbm %s2657_s0, %s2006_s13  ;;  %s248_s18 = sshll.u32 %s241_s17, 4  ;;  %s2420_s18 = int_to_ptr.vmem [resolvable:$true] %s248_s18 }
   0xd   : > { %p2422_p8 = pnand %p2187_p6, %p37_p4  ;;  %s2427_s20 = scalar_lea.sflag [#allocation3], %s237_s11 }
   0xe   : > { %s2261_s21 = scalar_lea.hbm %s2418_s16, 1024  ;;  %s2266_s24 = scalar_lea.hbm %s2657_s0, 2048 }
   0xf   : > { %p2262_p10 = scmp.ne.s32.totalorder %s2418_s16, %s2261_s21  ;;  %p2263_p11 = pneg %p2422_p8 }
  0x10   : > { %p2267_p0 = scmp.lt.u32.totalorder %s2418_s16, %s2657_s0  ;;  %p2268_p1 = scmp.lt.u32.totalorder %s2266_s24, %s2261_s21 }
  0x11   : > { %p2264_p12 = pnand %p2263_p11, %p2262_p10  ;;  %p2270_p3 = scmp.lt.u32.totalorder %s2261_s21, %s2418_s16 }
  0x12   : > { %p2269_p2 = por %p2268_p1, %p2267_p0 }
  0x13   : > { %p2265_p13 = pneg %p2264_p12 }
  0x14   : > { %p2271_p4 = por %p2270_p3, %p2269_p2 }
  0x16   : > { %p2272_p5 = pnand %p2271_p4, %p2265_p13 }
  0x18   : > { %2275 = shalt.err (!%p2272_p5)
}
  0x19   : > { %s2276_s11 = scalar_lea.vmem %s2420_s18, 1024  ;;  %s2327_s12 = smov [#allocation2]  }
  0x1a   : > { %p2277_p6 = scmp.ne.s32.totalorder %s2420_s18, %s2276_s11  ;;  %s2281_s13 = sshll.u32 %s2327_s12, 4  ;;  %s2282_s13 = int_to_ptr.vmem [resolvable:$false] %s2281_s13 }
  0x1b   : > { %s2283_s14 = scalar_lea.vmem %s2282_s13, 2048  ;;  %p2284_p9 = scmp.lt.s32.totalorder %s2420_s18, %s2282_s13 }
  0x1c   : > { %p2279_p10 = pnand %p2277_p6, %p2263_p11  ;;  %p2285_p0 = scmp.lt.s32.totalorder %s2283_s14, %s2276_s11 }
  0x1e   : > { %p2280_p12 = pneg %p2279_p10  ;;  %p2286_p1 = por %p2285_p0, %p2284_p9 }
  0x20   : > { %p2287_p2 = pnand %p2286_p1, %p2280_p12 }
  0x22   : > { %2290 = shalt.err (!%p2287_p2)
}
  0x23   : > { %s2328_s15 = smov 128   ;;  %s2329_s17 = smov 8  }
  0x24   : > { %2186 = dma.hbm_to_vmem [thread:$0]  (!%p2422_p8), %s2418_s16, 1024, %s2420_s18, %s2427_s20, %s2328_s15, %s2328_s15, %s2329_s17  }
  0x25   : > { %p256_p11 = scmp.lt.s32.totalorder %s2325_s27, 3  ;;  %p2667_p13 = scmp.ge.s32.totalorder %s2325_s27, 1 }
  0x27   : > { %p257_p3 = pnand %p2667_p13, %p256_p11 }
  0x28   : > { %s262_s21 = sand.u32 (!%p257_p3), 1, %s2317_s25  }
  0x29   : > { %260 = sbr.rel (%p257_p3) target bundleno = 1603 (0x643), region = 44  ;;  %s1982_s22 = sshll.u32 (!%p257_p3), %s262_s21, 6 }
  0x2a   : > { %s263_s23 = scalar_lea.sflag (!%p257_p3), [#allocation3], %s262_s21  ;;  %s266_s24 = scalar_lea.vmem (!%p257_p3), [#allocation2], %s1982_s22 }
  0x30   : > { %2308 = dma.done.wait (%p2409_p7), %s263_s23, 1024  }
  0x31   : > { %2310 = vsyncadd (%p2409_p7), %s263_s23, 4294966272  ;;  %vm328_vm0 = vcmask 261120   ;;  %v317_v0 = vld [vmem:[%s2658_s1] sm:$0xff]  ;;  %v318_v1 = vld [vmem:[%s2658_s1 + $0x8] sm:$0xff]  ;;  %v2330_v14 = vmov 0.0   ;;  %vm2331_vm1 = vmmov 0  }
  0x32   : > { %v319_v2 = vld [vmem:[%s2658_s1 + $0x10] sm:$0xff]  ;;  %v2167_v3 = vpack.c.bf16 %v318_v1, %v317_v0  ;;  %v320_v4 = vld [vmem:[%s2658_s1 + $0x18] sm:$0xff]  ;;  %v2475_v5 = vld [vmem:[%s266_s24] sm:$0xff]  ;;  %2076 = vmatprep.subr.mxu1 %v2330_v14  ;;  %2078 = vmatprep.mubr.msk.f32.mxu1 %vm2331_vm1, %v2330_v14  ;;  %vm1036_vm2 = vcmask 1041409   ;;  %vm1039_vm3 = vcmask 1042434   ;;  %vm1042_vm4 = vcmask 1043459  }
  0x33   : > { %v2171_v6 = vpack.c.bf16 %v320_v4, %v319_v2  ;;  %2064 = vmatprep.mubr.msk.f32.mxu0 %vm328_vm0, %v2475_v5  ;;  %v2479_v7 = vld [vmem:[%s266_s24 + $0x8] sm:$0xff]  ;;  %v2481_v8 = vld [vmem:[%s266_s24 + $0x10] sm:$0xff]  ;;  %v2487_v9 = vld [vmem:[%s266_s24 + $0x18] sm:$0xff]  ;;  %vm1045_vm5 = vcmask 1044484   ;;  %vm1048_vm6 = vcmask 1045509   ;;  %vm1051_vm7 = vcmask 1046534  }
  0x34   : > { %2168 = vmatprep.subr.bf16.mxu0 %v2167_v3  ;;  %v2489_v10 = vld [vmem:[%s266_s24 + $0x20] sm:$0xff]  ;;  %v2495_v11 = vld [vmem:[%s266_s24 + $0x28] sm:$0xff]  ;;  %v2497_v12 = vld [vmem:[%s266_s24 + $0x30] sm:$0xff]  ;;  %vm1054_vm8 = vcmask 1047559   ;;  %vm1057_vm9 = vcmask 64512   ;;  %p301_p7 = scmp.lt.s32.totalorder %s2392_s28, 1 }
  0x35   : > { %2170 = vmatpush3.bf16.msra.mxu0 %v2167_v3  ;;  %v2503_v13 = vld [vmem:[%s266_s24 + $0x38] sm:$0xff]  ;;  %v1985_v15 = vld [vmem:[%s2659_s2] ss:$0 sm:$0xff]  ;;  %vm1864_vm10 = vcmask 31744  }
  0x36   : > { %2172 = vmatprep.subr.bf16.mxu0 %v2171_v6  ;;  %v466_v24 = vld [vmem:[%s2660_s3] sm:$0x1]  ;;  %s2673_s28 = smov (!%p301_p7, %s2392_s28), 1 }
  0x37   : > { %s1983_s15 = sshll.u32 %s2673_s28, 3 }
  0x38   : > { %s308_s22 = scalar_lea.vmem %s2664_s7, %s1983_s15  ;;  %s304_s13 = scalar_lea.vmem %s2663_s6, %s1983_s15 }
  0x39   : > { %2174 = vmatpush3.bf16.msra.mxu0 %v2171_v6 }
  0x3a   : > { %2101 = vmatprep.subr.mxu0 %v2330_v14 }
  0x3c   : > { %2065 = vmatmul.mubr.msk.f32.vlgmr.msra.gmra.mrb[0].mxu0 %vm328_vm0, %v2479_v7 }
  0x3d   : > { %2067 = vmatprep.mubr.msk.f32.mxu0 %vm328_vm0, %v2481_v8 }
  0x40   : > { %2068 = vmatmul.mubr.msk.f32.gmra.mrb[2].mxu0 %vm328_vm0, %v2487_v9 }
  0x41   : > { %2070 = vmatprep.mubr.msk.f32.mxu0 %vm328_vm0, %v2489_v10 }
  0x44   : > { %2071 = vmatmul.mubr.msk.f32.gmra.mrb[4].mxu0 %vm328_vm0, %v2495_v11 }
  0x45   : > { %2073 = vmatprep.mubr.msk.f32.mxu0 %vm328_vm0, %v2497_v12 }
  0x48   : > { %2074 = vmatmul.mubr.msk.f32.gmra.mrb[6].mxu0 %vm328_vm0, %v2503_v13 }
  0x49   : > { %2103 = vmatprep.mubr.msk.f32.mxu0 %vm2331_vm1, %v2330_v14 }
 0x10f   : > { %v2066_v16 = vpop.f32.mrb[0].mxu0 }
 0x110   : > { %v419_v17 = vpop.f32.mrb[1].mxu0  ;;  %v425_v19 = vadd.f32 %v2066_v16, %v1985_v15 }
 0x111   : > { %v420_v18 = vadd.f32 %v1985_v15, %v419_v17 }
 0x112   : > { %v459_v25 = vmax.f32 %v425_v19, 0.0 }
 0x113   : > { %v458_v20 = vmax.f32 %v420_v18, 0.0  ;;  %v2069_v21 = vpop.f32.mrb[2].mxu0 }
 0x114   : > { %v429_v22 = vpop.f32.mrb[3].mxu0  ;;  %v435_v31 = vadd.f32 %v2069_v21, %v1985_v15 }
 0x115   : > { %v430_v23 = vadd.f32 %v1985_v15, %v429_v22  ;;  %2077 = vmatpush3.xpose.msra.mxu1 %v458_v20 }
 0x116   : > { %2081 = vmatprep.subr.mxu1 %v2330_v14  ;;  %v461_v37 = vmax.f32 %v435_v31, 0.0 }
 0x117   : > { %v2072_v26 = vpop.f32.mrb[4].mxu0  ;;  %v460_v29 = vmax.f32 %v430_v23, 0.0 }
 0x118   : > { %v445_v27 = vadd.f32 %v2072_v26, %v1985_v15  ;;  %v439_v28 = vpop.f32.mrb[5].mxu0  ;;  %2079 = vmatmul.mubr.f32.vlgmr.msra.gmra.mrb[0].mxu1 %v466_v24 }
 0x119   : > { %2082 = vmatpush3.xpose.msra.mxu1 %v459_v25  ;;  %2083 = vmatprep.mubr.msk.f32.mxu1 %vm2331_vm1, %v2330_v14  ;;  %v440_v35 = vadd.f32 %v1985_v15, %v439_v28 }
 0x11a   : > { %v463_v30 = vmax.f32 %v445_v27, 0.0  ;;  %2086 = vmatprep.subr.mxu1 %v2330_v14 }
 0x11b   : > { %v2075_v32 = vpop.f32.mrb[6].mxu0  ;;  %v462_v38 = vmax.f32 %v440_v35, 0.0 }
 0x11c   : > { %2084 = vmatmul.mubr.f32.vlgmr.msra.gmra.mrb[2].mxu1 %v466_v24  ;;  %2102 = vmatpush3.xpose.msra.mxu0 %v463_v30  ;;  %v455_v33 = vadd.f32 %v2075_v32, %v1985_v15  ;;  %v449_v34 = vpop.f32.mrb[7].mxu0 }
 0x11d   : > { %2087 = vmatpush3.xpose.msra.mxu1 %v460_v29  ;;  %2088 = vmatprep.mubr.msk.f32.mxu1 %vm2331_vm1, %v2330_v14  ;;  %v450_v39 = vadd.f32 %v1985_v15, %v449_v34 }
 0x11e   : > { %2091 = vmatprep.subr.mxu1 %v2330_v14  ;;  %v465_v36 = vmax.f32 %v455_v33, 0.0  ;;  %2111 = vmatprep.subr.mxu0 %v2330_v14 }
 0x11f   : > { %2104 = vmatmul.mubr.f32.vlgmr.msra.gmra.mrb[8].mxu0 %v466_v24  ;;  %v464_v40 = vmax.f32 %v450_v39, 0.0 }
 0x120   : > { %2089 = vmatmul.mubr.f32.vlgmr.msra.gmra.mrb[4].mxu1 %v466_v24  ;;  %2112 = vmatpush3.xpose.msra.mxu0 %v465_v36 }
 0x121   : > { %2092 = vmatpush3.xpose.msra.mxu1 %v461_v37  ;;  %2093 = vmatprep.mubr.msk.f32.mxu1 %vm2331_vm1, %v2330_v14 }
 0x122   : > { %2096 = vmatprep.subr.mxu1 %v2330_v14  ;;  %2113 = vmatprep.mubr.msk.f32.mxu0 %vm2331_vm1, %v2330_v14 }
 0x123   : > { %2114 = vmatmul.mubr.f32.vlgmr.msra.gmra.mrb[10].mxu0 %v466_v24  ;;  %2121 = vmatprep.subr.mxu0 %v2330_v14 }
 0x124   : > { %2094 = vmatmul.mubr.f32.vlgmr.msra.gmra.mrb[6].mxu1 %v466_v24  ;;  %2122 = vmatpush3.msra.mxu0 %v2479_v7 }
 0x125   : > { %2097 = vmatpush3.xpose.msra.mxu1 %v462_v38  ;;  %2098 = vmatprep.mubr.msk.f32.mxu1 %vm2331_vm1, %v2330_v14 }
 0x126   : > { %2106 = vmatprep.subr.mxu1 %v2330_v14  ;;  %2123 = vmatprep.mubr.msk.f32.mxu0 %vm2331_vm1, %v2330_v14 }
 0x127   : > { %2131 = vmatprep.subr.mxu0 %v2330_v14 }
 0x128   : > { %2099 = vmatmul.mubr.f32.vlgmr.msra.gmra.mrb[8].mxu1 %v466_v24 }
 0x129   : > { %2107 = vmatpush3.xpose.msra.mxu1 %v464_v40  ;;  %2108 = vmatprep.mubr.msk.f32.mxu1 %vm2331_vm1, %v2330_v14 }
 0x12a   : > { %2116 = vmatprep.subr.mxu1 %v2330_v14 }
 0x12c   : > { %2109 = vmatmul.mubr.f32.vlgmr.msra.gmra.mrb[10].mxu1 %v466_v24 }
 0x12d   : > { %2117 = vmatpush3.msra.mxu1 %v2475_v5  ;;  %2118 = vmatprep.mubr.msk.f32.mxu1 %vm2331_vm1, %v2330_v14 }
 0x12e   : > { %2126 = vmatprep.subr.mxu1 %v2330_v14 }
 0x1eb   : > { %v533_v41 = vpop.f32.mrb[0].mxu1 }
 0x1ec   : > { %v2080_v42 = vpop.f32.mrb[1].mxu1 }
 0x1ef   : > { %v603_v43 = vpop.f32.mrb[2].mxu1 }
 0x1f0   : > { %v1035_v44 = vrot.slane %v603_v43, 7  ;;  %v2085_v45 = vpop.f32.mrb[3].mxu1 }
 0x1f2   : > { %v1037_v46 = vsel %vm1036_vm2, %v1035_v44, %v533_v41  ;;  %v883_v47 = vpop.f32.mrb[8].mxu0 }
 0x1f3   : > { %v673_v48 = vpop.f32.mrb[4].mxu1  ;;  %v2105_v49 = vpop.f32.mrb[9].mxu0  ;;  %v1047_v60 = vrot.slane %v883_v47, 3 }
 0x1f4   : > { %v1038_v50 = vrot.slane %v673_v48, 6  ;;  %v2090_v51 = vpop.f32.mrb[5].mxu1 }
 0x1f6   : > { %v1040_v52 = vsel %vm1039_vm3, %v1038_v50, %v1037_v46  ;;  %v1023_v53 = vpop.f32.mrb[10].mxu0 }
 0x1f7   : > { %v743_v54 = vpop.f32.mrb[6].mxu1  ;;  %v2115_v55 = vpop.f32.mrb[11].mxu0  ;;  %v1053_v1 = vrot.slane %v1023_v53, 1 }
 0x1f8   : > { %v1041_v56 = vrot.slane %v743_v54, 5  ;;  %v2095_v57 = vpop.f32.mrb[7].mxu1 }
 0x1fa   : > { %v1043_v58 = vsel %vm1042_vm4, %v1041_v56, %v1040_v52 }
 0x1fb   : > { %v813_v59 = vpop.f32.mrb[8].mxu1 }
 0x1fc   : > { %v1044_v61 = vrot.slane %v813_v59, 4  ;;  %v2100_v62 = vpop.f32.mrb[9].mxu1 }
 0x1fe   : > { %v1046_v63 = vsel %vm1045_vm5, %v1044_v61, %v1043_v58 }
 0x1ff   : > { %v953_v0 = vpop.f32.mrb[10].mxu1  ;;  %v1049_v2 = vsel %vm1048_vm6, %v1047_v60, %v1046_v63 }
 0x200   : > { %v1050_v3 = vrot.slane %v953_v0, 2  ;;  %v2110_v4 = vpop.f32.mrb[11].mxu1 }
 0x202   : > { %v1052_v5 = vsel %vm1051_vm7, %v1050_v3, %v1049_v2 }
 0x203   : > { %v1055_v6 = vsel %vm1054_vm8, %v1053_v1, %v1052_v5 }
 0x204   : > { %v1058_v7 = vsel %vm1057_vm9, %v1055_v6, -inf }
 0x205   : > { %1059 = vmax.xlane.f32.xlu0 %v1058_v7 }
 0x292   : > { %v1060_v15 = vpop.xlane.xlu0 %1059 }
 0x293   : > { %v1062_v16 = vrot.slane %v1060_v15, 1  ;;  %v1063_v17 = vrot.slane %v1060_v15, 2  ;;  %v1064_v18 = vrot.slane %v1060_v15, 3  ;;  %v1065_v19 = vrot.slane %v1060_v15, 4 }
 0x294   : > { %v1066_v20 = vrot.slane %v1060_v15, 5  ;;  %v1067_v21 = vrot.slane %v1060_v15, 6  ;;  %v1068_v22 = vrot.slane %v1060_v15, 7  ;;  %v1077_v23 = vsub.f32 %v533_v41, %v1060_v15 }
 0x295   : > { %v1078_v24 = vsub.f32 %v603_v43, %v1062_v16  ;;  %v1079_v25 = vsub.f32 %v673_v48, %v1063_v17  ;;  %v1080_v26 = vsub.f32 %v743_v54, %v1064_v18  ;;  %v1081_v27 = vsub.f32 %v813_v59, %v1065_v19 }
 0x296   : > { %v1082_v28 = vsub.f32 %v883_v47, %v1066_v20  ;;  %v1085_v29 = vmul.f32 1.442695, %v1077_v23  ;;  %v1083_v30 = vsub.f32 %v953_v0, %v1067_v21  ;;  %v1084_v34 = vsub.f32 %v1023_v53, %v1068_v22 }
 0x297   : > { %v1087_v31 = vmul.f32 1.442695, %v1078_v24  ;;  %v1089_v32 = vmul.f32 1.442695, %v1079_v25  ;;  %v1091_v33 = vmul.f32 1.442695, %v1080_v26 }
 0x298   : > { %2225 = vpow2.f32 %v1085_v29  ;;  %v1093_v35 = vmul.f32 1.442695, %v1081_v27  ;;  %v1095_v36 = vmul.f32 1.442695, %v1082_v28  ;;  %v1097_v37 = vmul.f32 1.442695, %v1083_v30 }
 0x299   : > { %2227 = vpow2.f32 %v1087_v31  ;;  %v1099_v38 = vmul.f32 1.442695, %v1084_v34 }
 0x29a   : > { %2229 = vpow2.f32 %v1089_v32 }
 0x29b   : > { %2231 = vpow2.f32 %v1091_v33 }
 0x29c   : > { %2233 = vpow2.f32 %v1093_v35 }
 0x29d   : > { %2235 = vpow2.f32 %v1095_v36 }
 0x29e   : > { %2237 = vpow2.f32 %v1097_v37 }
 0x29f   : > { %2239 = vpow2.f32 %v1099_v38 }
 0x2a2   : > { %v2226_v39 = vpop.eup %2225 }
 0x2a3   : > { %v2228_v40 = vpop.eup %2227 }
 0x2a4   : > { %v2230_v41 = vpop.eup %2229  ;;  %v1109_v42 = vrot.slane %v2228_v40, 7 }
 0x2a5   : > { %v2232_v43 = vpop.eup %2231  ;;  %v1111_v44 = vrot.slane %v2230_v41, 6 }
 0x2a6   : > { %v2234_v45 = vpop.eup %2233  ;;  %v1110_v46 = vsel %vm1036_vm2, %v1109_v42, %v2226_v39  ;;  %v1113_v47 = vrot.slane %v2232_v43, 5 }
 0x2a7   : > { %v2236_v48 = vpop.eup %2235  ;;  %v1112_v49 = vsel %vm1039_vm3, %v1111_v44, %v1110_v46  ;;  %v1115_v50 = vrot.slane %v2234_v45, 4 }
 0x2a8   : > { %v2238_v51 = vpop.eup %2237  ;;  %v1114_v52 = vsel %vm1042_vm4, %v1113_v47, %v1112_v49  ;;  %v1117_v53 = vrot.slane %v2236_v48, 3 }
 0x2a9   : > { %v2240_v54 = vpop.eup %2239  ;;  %v1116_v55 = vsel %vm1045_vm5, %v1115_v50, %v1114_v52  ;;  %v1119_v56 = vrot.slane %v2238_v51, 2 }
 0x2aa   : > { %v1118_v57 = vsel %vm1048_vm6, %v1117_v53, %v1116_v55  ;;  %v1121_v58 = vrot.slane %v2240_v54, 1 }
 0x2ab   : > { %v1120_v59 = vsel %vm1051_vm7, %v1119_v56, %v1118_v57 }
 0x2ac   : > { %v1122_v60 = vsel %vm1054_vm8, %v1121_v58, %v1120_v59 }
 0x2ad   : > { %v1124_v61 = vsel %vm1057_vm9, %v1122_v60, 0.0 }
 0x2ae   : > { %1125 = vadd.xlane.f32.xlu0 %v1124_v61 }
 0x33b   : > { %v1126_v62 = vpop.xlane.xlu0 %1125 }
 0x33c   : > { %v1128_v63 = vrot.slane %v1126_v62, 1  ;;  %v1129_v0 = vrot.slane %v1126_v62, 2  ;;  %v1130_v1 = vrot.slane %v1126_v62, 3  ;;  %v1131_v2 = vrot.slane %v1126_v62, 4 }
 0x33d   : > { %2241 = vrcp.f32 %v1126_v62  ;;  %v1132_v3 = vrot.slane %v1126_v62, 5  ;;  %v1133_v4 = vrot.slane %v1126_v62, 6  ;;  %v1134_v5 = vrot.slane %v1126_v62, 7 }
 0x33e   : > { %2243 = vrcp.f32 %v1128_v63 }
 0x33f   : > { %2245 = vrcp.f32 %v1129_v0 }
 0x340   : > { %2247 = vrcp.f32 %v1130_v1 }
 0x341   : > { %2249 = vrcp.f32 %v1131_v2 }
 0x342   : > { %2251 = vrcp.f32 %v1132_v3 }
 0x343   : > { %2253 = vrcp.f32 %v1133_v4 }
 0x344   : > { %2255 = vrcp.f32 %v1134_v5 }
 0x347   : > { %v2242_v6 = vpop.eup %2241 }
 0x348   : > { %v2244_v7 = vpop.eup %2243  ;;  %v1144_v15 = vmul.f32 %v2242_v6, %v2226_v39  ;;  %v2332_v39 = vmov 0.0|0.0  }
 0x349   : > { %v2246_v16 = vpop.eup %2245  ;;  %v1146_v17 = vmul.f32 %v2244_v7, %v2228_v40 }
 0x34a   : > { %v2248_v18 = vpop.eup %2247  ;;  %2119 = vmatmul.mubr.msk.f32.vlgmr.msra.gmra.mrb[12].mxu1 %vm1057_vm9, %v1144_v15  ;;  %v1148_v19 = vmul.f32 %v2246_v16, %v2230_v41  ;;  %v1761_v41 = vld [vmem:[%s2661_s4 + $0x10] sm:$0xff]  ;;  %v2002_v16 = vld [vmem:[%s2662_s5] ss:$0 sm:$0xff] }
 0x34b   : > { %v2250_v20 = vpop.eup %2249  ;;  %v1167_v21 = vrot.slane %v1146_v17, 7  ;;  %2124 = vmatmul.mubr.msk.f32.vlgmr.msra.gmra.mrb[12].mxu0 %vm1057_vm9, %v1146_v17  ;;  %2127 = vmatpush3.msra.mxu1 %v2481_v8  ;;  %v1150_v22 = vmul.f32 %v2248_v18, %v2232_v43 }
 0x34c   : > { %v2252_v23 = vpop.eup %2251  ;;  %2128 = vmatprep.mubr.msk.f32.mxu1 %vm2331_vm1, %v2330_v14  ;;  %v1169_v24 = vrot.slane %v1148_v19, 6  ;;  %2132 = vmatpush3.msra.mxu0 %v2487_v9  ;;  %v1152_v25 = vmul.f32 %v2250_v20, %v2234_v45 }
 0x34d   : > { %v2254_v26 = vpop.eup %2253  ;;  %v1168_v27 = vsel %vm1036_vm2, %v1167_v21, %v1144_v15  ;;  %2133 = vmatprep.mubr.msk.f32.mxu0 %vm2331_vm1, %v2330_v14  ;;  %v1171_v28 = vrot.slane %v1150_v22, 5  ;;  %2136 = vmatprep.subr.mxu1 %v2330_v14  ;;  %v1154_v8 = vmul.f32 %v2252_v23, %v2236_v48 }
 0x34e   : > { %v2256_v29 = vpop.eup %2255  ;;  %v1170_v30 = vsel %vm1039_vm3, %v1169_v24, %v1168_v27  ;;  %2129 = vmatmul.mubr.msk.f32.vlgmr.msra.gmra.mrb[14].mxu1 %vm1057_vm9, %v1148_v19  ;;  %v1173_v31 = vrot.slane %v1152_v25, 4  ;;  %2141 = vmatprep.subr.mxu0 %v2330_v14  ;;  %v1156_v9 = vmul.f32 %v2254_v26, %v2238_v51 }
 0x34f   : > { %v1172_v32 = vsel %vm1042_vm4, %v1171_v28, %v1170_v30  ;;  %2134 = vmatmul.mubr.msk.f32.vlgmr.msra.gmra.mrb[14].mxu0 %vm1057_vm9, %v1150_v22  ;;  %2137 = vmatpush3.msra.mxu1 %v2489_v10  ;;  %v1175_v33 = vrot.slane %v1154_v8, 3  ;;  %v1158_v34 = vmul.f32 %v2256_v29, %v2240_v54 }
 0x350   : > { %2138 = vmatprep.mubr.msk.f32.mxu1 %vm2331_vm1, %v2330_v14  ;;  %v1174_v35 = vsel %vm1045_vm5, %v1173_v31, %v1172_v32  ;;  %2142 = vmatpush3.msra.mxu0 %v2495_v11  ;;  %v1177_v36 = vrot.slane %v1156_v9, 2 }
 0x351   : > { %2143 = vmatprep.mubr.msk.f32.mxu0 %vm2331_vm1, %v2330_v14  ;;  %v1176_v37 = vsel %vm1048_vm6, %v1175_v33, %v1174_v35  ;;  %2146 = vmatprep.subr.mxu1 %v2330_v14  ;;  %v1179_v38 = vrot.slane %v1158_v34, 1 }
 0x352   : > { %2139 = vmatmul.mubr.msk.f32.vlgmr.msra.gmra.mrb[16].mxu1 %vm1057_vm9, %v1152_v25  ;;  %v1178_v10 = vsel %vm1051_vm7, %v1177_v36, %v1176_v37  ;;  %2151 = vmatprep.subr.mxu0 %v2330_v14 }
 0x353   : > { %2144 = vmatmul.mubr.msk.f32.vlgmr.msra.gmra.mrb[16].mxu0 %vm1057_vm9, %v1154_v8  ;;  %2147 = vmatpush3.msra.mxu1 %v2497_v12  ;;  %v1180_v11 = vsel %vm1054_vm8, %v1179_v38, %v1178_v10  ;;  %v1759_v12 = vld [vmem:[%s2661_s4] sm:$0xff] }
 0x354   : > { %2148 = vmatprep.mubr.msk.f32.mxu1 %vm2331_vm1, %v2330_v14  ;;  %2152 = vmatpush3.msra.mxu0 %v2503_v13  ;;  %1182 = vst.msk [vmem:[%s308_s22] sm:$0xff] %vm1057_vm9, %v1180_v11  ;;  %v1760_v13 = vld [vmem:[%s2661_s4 + $0x8] sm:$0xff] }
 0x355   : > { %2153 = vmatprep.mubr.msk.f32.mxu0 %vm2331_vm1, %v2330_v14  ;;  %2175 = vmatprep.subr.bf16.mxu1 %v2332_v39  ;;  %v2176_v40 = vpack.c.bf16 %v1760_v13, %v1759_v12 }
 0x356   : > { %2149 = vmatmul.mubr.msk.f32.vlgmr.msra.gmra.mrb[18].mxu1 %vm1057_vm9, %v1156_v9 }
 0x357   : > { %2154 = vmatmul.mubr.msk.f32.vlgmr.msra.gmra.mrb[18].mxu0 %vm1057_vm9, %v1158_v34  ;;  %2164 = vmatprep.mubr.msk.f32.mxu1 %vm2331_vm1, %v2330_v14  ;;  %v1762_v14 = vld [vmem:[%s2661_s4 + $0x18] sm:$0xff] }
 0x358   : > { %2177 = vmatpush3.bf16.msra.mxu1 %v2176_v40  ;;  %v2179_v42 = vpack.c.bf16 %v1762_v14, %v1761_v41 }
 0x359   : > { %2178 = vmatprep.subr.bf16.mxu1 %v2332_v39 }
 0x35c   : > { %2180 = vmatpush3.bf16.msra.mxu1 %v2179_v42 }
 0x41d   : > { %v1251_v43 = vpop.f32.mrb[12].mxu1 }
 0x41e   : > { %v2120_v44 = vpop.f32.mrb[13].mxu1  ;;  %v1323_v45 = vpop.f32.mrb[12].mxu0 }
 0x41f   : > { %v1778_v46 = vrot.slane %v1323_v45, 7  ;;  %v2125_v47 = vpop.f32.mrb[13].mxu0 }
 0x421   : > { %v1779_v48 = vsel %vm1036_vm2, %v1778_v46, %v1251_v43  ;;  %v1395_v49 = vpop.f32.mrb[14].mxu1 }
 0x422   : > { %v1780_v50 = vrot.slane %v1395_v49, 6  ;;  %v2130_v51 = vpop.f32.mrb[15].mxu1  ;;  %v1467_v52 = vpop.f32.mrb[14].mxu0 }
 0x423   : > { %v1782_v53 = vrot.slane %v1467_v52, 5  ;;  %v2135_v54 = vpop.f32.mrb[15].mxu0 }
 0x424   : > { %v1781_v55 = vsel %vm1039_vm3, %v1780_v50, %v1779_v48 }
 0x425   : > { %v1783_v56 = vsel %vm1042_vm4, %v1782_v53, %v1781_v55  ;;  %v1539_v57 = vpop.f32.mrb[16].mxu1 }
 0x426   : > { %v1784_v58 = vrot.slane %v1539_v57, 4  ;;  %v2140_v59 = vpop.f32.mrb[17].mxu1  ;;  %v1611_v60 = vpop.f32.mrb[16].mxu0 }
 0x427   : > { %v1786_v61 = vrot.slane %v1611_v60, 3  ;;  %v2145_v62 = vpop.f32.mrb[17].mxu0 }
 0x428   : > { %v1785_v63 = vsel %vm1045_vm5, %v1784_v58, %v1783_v56 }
 0x429   : > { %v1787_v0 = vsel %vm1048_vm6, %v1786_v61, %v1785_v63  ;;  %v1683_v1 = vpop.f32.mrb[18].mxu1 }
 0x42a   : > { %v1788_v2 = vrot.slane %v1683_v1, 2  ;;  %v2150_v3 = vpop.f32.mrb[19].mxu1  ;;  %v1755_v4 = vpop.f32.mrb[18].mxu0 }
 0x42b   : > { %v1790_v5 = vrot.slane %v1755_v4, 1  ;;  %v2155_v6 = vpop.f32.mrb[19].mxu0 }
 0x42c   : > { %v1789_v7 = vsel %vm1051_vm7, %v1788_v2, %v1787_v0 }
 0x42d   : > { %v1791_v15 = vsel %vm1054_vm8, %v1790_v5, %v1789_v7 }
 0x42e   : > { %2165 = vmatmul.mubr.msk.f32.vlgmr.msra.gmra.mrb[20].mxu1 %vm328_vm0, %v1791_v15 }
 0x501   : > { %v1860_v17 = vpop.f32.mrb[20].mxu1 }
 0x502   : > { %v1861_v18 = vadd.f32 %v2002_v16, %v1860_v17  ;;  %v2166_v19 = vpop.f32.mrb[21].mxu1 }
 0x504   : > { %v1865_v20 = vsel %vm1864_vm10, %v1861_v18, -inf }
 0x505   : > { %1866 = vmax.xlane.f32.xlu1 %v1865_v20 }
 0x592   : > { %v1867_v21 = vpop.xlane.xlu1 %1866 }
 0x593   : > { %v1868_v22 = vsub.f32 %v1861_v18, %v1867_v21 }
 0x595   : > { %v1869_v23 = vmul.f32 1.442695, %v1868_v22 }
 0x597   : > { %2257 = vpow2.f32 %v1869_v23 }
 0x5a1   : > { %v2258_v24 = vpop.eup %2257 }
 0x5a2   : > { %v1871_v25 = vsel %vm1864_vm10, %v2258_v24, 0.0 }
 0x5a3   : > { %1872 = vadd.xlane.f32.xlu1 %v1871_v25 }
 0x630   : > { %v1873_v26 = vpop.xlane.xlu1 %1872 }
 0x631   : > { %2259 = vlog2.f32 %v1873_v26 }
 0x63b   : > { %v2260_v27 = vpop.eup %2259 }
 0x63c   : > { %v1875_v28 = vmul.f32 0.6931472, %v2260_v27 }
 0x63e   : > { %v1876_v8 = vadd.f32 %v1875_v28, %v1867_v21 }
 0x640   : > { %v1877_v29 = vsub.f32 %v1861_v18, %v1876_v8 }
 0x642   : > { %1878 = vst.msk [vmem:[%s304_s13] sm:$0xff] %vm1864_vm10, %v1877_v29 }
 0x643 PF: > { %p18_p8 = scmp.ge.s32.totalorder %s2395_s29, 4   ;;  %s2668_s24 = smov %s2317_s25 }
 0x644   : > { %s2669_s25 = smov %s2321_s26  ;;  %s2670_s26 = smov %s2405_s9 }
 0x645   : > { %s2671_s27 = smov %s2395_s29  ;;  %20 = sbr.rel (!%p18_p8) target bundleno = 3 (0x3), region = 96 }
 0x64c   :  { %1912 = vsyncpa [#allocation3], 1 }
 0x64d   :  { %1914 = vsyncpa [#allocation3 + $0x1], 1 }

</bundles_post_ra>
